<compile_context>
chip_gen: v7x
topology: tpu7x:2x2x1
jax: 0.10.0
libtpu: 0.0.40
codegen_flags: <defaults>
</compile_context>

<pallas_src>
import functools

import jax
import jax.numpy as jnp
from jax import lax
from jax.experimental import pallas as pl
from jax.experimental.pallas import tpu as pltpu

_MIB = 1 << 20


def _round_up(v, m):
    return (v + m - 1) // m * m


def _pick_block_rows(n_pad):
    """Largest row block <= 128 that still gives >= 4 grid steps."""
    for t in (128, 64, 32, 16, 8):
        if n_pad % t == 0 and n_pad // t >= 4:
            return t
    return 8


def _vmem_limit(est_bytes):
    # >= the per-generation scoped default, <= v7x's 64 MiB/TC with headroom.
    return int(min(max(est_bytes * 3 // 2, 32 * _MIB), 56 * _MIB))


def _prep_vmem_bytes(n_pad, cp, hp):
    inp = n_pad * cp * 4 + cp * cp * 4 + cp * 4 + cp * hp * 2
    out = 3 * n_pad * cp * 2 + n_pad * 4 + n_pad * hp * 2
    live = 2 * n_pad * cp * 4 + n_pad * hp * 4
    return inp + out + live


def _main_vmem_bytes(n_pad, cp, hp, tm):
    streamed = 2 * (tm * cp * 2 + 2 * tm * cp * 4)          # h16 + x + out (double-buffered)
    resident = 2 * (2 * n_pad * cp * 2 + n_pad * 4 + n_pad * hp * 2
                    + 2 * cp * hp * 2 + hp * 4 + hp * cp * 2 + cp * 4)
    live = 5 * tm * n_pad * 4 + 8 * tm * hp * 4 + 4 * tm * cp * 4
    return streamed + resident + live


# ---------------------------------------------------------------------------
# Kernel A (prep): fc1, column-wise L2 normalisation, hoisted h @ Wb.
# Grid-less: F.normalize(dim=0) needs column norms over ALL nodes.
# ---------------------------------------------------------------------------
def _prep_kernel(x_ref, w1_ref, b1_ref, wgb_ref,
                 h16_ref, xnhi_ref, xnlo_ref, hsq_ref, hb16_ref, *, n_real):
    f32, bf16 = jnp.float32, jnp.bfloat16
    x = x_ref[...]                                               # (Np, Cp) f32

    # fc1 (f32: h drives the kNN selection; tiny relative to the rest).
    h = jnp.dot(x, w1_ref[...], preferred_element_type=f32) + b1_ref[...]
    h = jnp.maximum(h, 0.0)
    # Zero padded node rows (relu(b1) would otherwise pollute column norms).
    row_ids = lax.broadcasted_iota(jnp.int32, (h.shape[0], 1), 0)
    h = jnp.where(row_ids < n_real, h, 0.0)
    h16_ref[...] = h.astype(bf16)

    # F.normalize(h, p=2, dim=0): per-column L2 normalisation (rsqrt -> EUP).
    colss = jnp.sum(h * h, axis=0, keepdims=True)                # (1, Cp)
    xn = h * lax.rsqrt(jnp.maximum(colss, 1e-24))                # eps = 1e-12
    xn_hi = xn.astype(bf16)                                      # hi/lo bf16 split
    xnhi_ref[...] = xn_hi
    xnlo_ref[...] = (xn - xn_hi.astype(f32)).astype(bf16)

    # 0.5 * ||xn_j||^2 as a lane-dense (1, Np) row, straight off the MXU.
    # Padded columns get +inf so they are never selected as neighbours.
    xn2 = xn * xn
    hsq = 0.5 * lax.dot_general(jnp.ones((1, xn.shape[1]), f32), xn2,
                                (((1,), (1,)), ((), ())),
                                preferred_element_type=f32)      # (1, Np)
    col_ids = lax.broadcasted_iota(jnp.int32, hsq.shape, 1)
    hsq_ref[...] = jnp.where(col_ids < n_real, hsq, jnp.inf)

    # Loop-invariant neighbour projection h @ Wb (hoisted out of the k-loop).
    hb = jnp.dot(h.astype(bf16), wgb_ref[...], preferred_element_type=f32)
    hb16_ref[...] = hb.astype(bf16)                              # (Np, Hp)


# ---------------------------------------------------------------------------
# Kernel B (main): per query-row block — distances, kNN, EdgeConv max-aggr,
# fc2, residual.  grid = (Np // TM,), "parallel".
# ---------------------------------------------------------------------------
def _graph_kernel(h16_ref, x_ref, xnhi_ref, xnlo_ref, hsq_ref, hball_ref,
                  wga_ref, wgb_ref, bg_ref, w2_ref, b2_ref, o_ref,
                  *, k, block_rows):
    f32, bf16 = jnp.float32, jnp.bfloat16
    blk = pl.program_id(0)
    row0 = pl.multiple_of(blk * block_rows, block_rows)

    # hi = x_i @ Wa + b ;  base = hi - x_i @ Wb,  so  e_j = base + x_j @ Wb.
    h16 = h16_ref[...]                                           # (TM, Cp) bf16
    hi = jnp.dot(h16, wga_ref[...], preferred_element_type=f32) + bg_ref[...]
    base = hi - jnp.dot(h16, wgb_ref[...], preferred_element_type=f32)

    # Distance gram via a 3-term bf16 hi/lo split (f32-level accuracy, bf16
    # MXU cost).  Query rows are sliced from the resident arrays with pl.ds.
    chi = xnhi_ref[...]                                          # (Np, Cp) bf16
    clo = xnlo_ref[...]
    qhi = xnhi_ref[pl.ds(row0, block_rows), :]                   # (TM, Cp) bf16
    qlo = xnlo_ref[pl.ds(row0, block_rows), :]
    dims = (((1,), (1,)), ((), ()))
    g = (lax.dot_general(qhi, chi, dims, preferred_element_type=f32)
         + lax.dot_general(qlo, chi, dims, preferred_element_type=f32)
         + lax.dot_general(qhi, clo, dims, preferred_element_type=f32))

    # d = 0.5*||xn_j||^2 - xn_i.xn_j  (per-row constant term dropped; same argmin).
    d = hsq_ref[...] - g                                         # (TM, Np) f32

    n_pad = d.shape[1]
    col_ids = lax.broadcasted_iota(jnp.int32, d.shape, 1)
    row_vec = row0 + lax.broadcasted_iota(jnp.int32, (block_rows, 1), 0)

    # Self edge is the nearest neighbour: take it for free (e_self = relu(hi)),
    # mask the diagonal, run only k-1 gather iterations.
    acc0 = jnp.maximum(hi, 0.0)                                  # (TM, Hp)
    d = jnp.where(col_ids == row_vec, jnp.inf, d)

    hb_all = hball_ref[...]                                      # (Np, Hp) bf16

    def body(_, carry):
        d, acc = carry
        mval = jnp.min(d, axis=-1, keepdims=True)                # (TM, 1)
        idx = jnp.min(jnp.where(d <= mval, col_ids, n_pad),
                      axis=-1, keepdims=True)                    # lowest-index tie-break
        sel = col_ids == idx
        onehot = jnp.where(sel, 1.0, 0.0).astype(bf16)           # exact in bf16
        gathered = jnp.dot(onehot, hb_all,
                           preferred_element_type=f32)           # x_j @ Wb
        acc = jnp.maximum(acc, jnp.maximum(base + gathered, 0.0))
        return jnp.where(sel, jnp.inf, d), acc

    _, acc = lax.fori_loop(0, k - 1, body, (d, acc0), unroll=2)

    # fc2 + ReLU, drop_path = Identity, residual.
    y = jnp.dot(acc.astype(bf16), w2_ref[...],
                preferred_element_type=f32) + b2_ref[...]
    o_ref[...] = jnp.maximum(y, 0.0) + x_ref[...]


# ---------------------------------------------------------------------------
# Wrapper
# ---------------------------------------------------------------------------
def grapher_forward(x, params, k):
    w1t, b1, wga, wgb, bg, w2t, b2 = params
    n, c = x.shape
    cp = _round_up(c, 128)          # lane-dense channel dim
    hp = _round_up(2 * c, 128)      # lane-dense hidden (2C) dim
    n_pad = _round_up(n, 128)       # lane-dense node dim for the (TM, Np) state
    tm = _pick_block_rows(n_pad)
    f32, bf16 = jnp.float32, jnp.bfloat16

    def pad2(a, rows, cols, dtype):
        a = a.astype(f32)
        return jnp.pad(a, ((0, rows - a.shape[0]),
                           (0, cols - a.shape[1]))).astype(dtype)

    xp = pad2(x, n_pad, cp, f32)
    w1p = pad2(w1t, cp, cp, f32)
    b1p = pad2(b1, 1, cp, f32)
    wgap = pad2(wga, cp, hp, bf16)
    wgbp = pad2(wgb, cp, hp, bf16)
    bgp = pad2(bg, 1, hp, f32)
    w2p = pad2(w2t, hp, cp, bf16)
    b2p = pad2(b2, 1, cp, f32)

    vmem = pl.BlockSpec(memory_space=pltpu.MemorySpace.VMEM)

    h16, xnhi, xnlo, hsq, hb16 = pl.pallas_call(
        functools.partial(_prep_kernel, n_real=n),
        out_shape=(jax.ShapeDtypeStruct((n_pad, cp), bf16),
                   jax.ShapeDtypeStruct((n_pad, cp), bf16),
                   jax.ShapeDtypeStruct((n_pad, cp), bf16),
                   jax.ShapeDtypeStruct((1, n_pad), f32),
                   jax.ShapeDtypeStruct((n_pad, hp), bf16)),
        in_specs=[vmem] * 4,
        out_specs=(vmem,) * 5,
        compiler_params=pltpu.CompilerParams(
            vmem_limit_bytes=_vmem_limit(_prep_vmem_bytes(n_pad, cp, hp))),
    )(xp, w1p, b1p, wgbp)

    row_c = pl.BlockSpec((tm, cp), lambda i: (i, 0))

    def full(shape):
        return pl.BlockSpec(shape, lambda i: (0, 0))   # resident across steps

    out = pl.pallas_call(
        functools.partial(_graph_kernel, k=k, block_rows=tm),
        out_shape=jax.ShapeDtypeStruct((n_pad, cp), f32),
        grid=(n_pad // tm,),
        in_specs=[row_c,               # h (bf16, row block)
                  row_c,               # x residual (row block) — aliased to out
                  full((n_pad, cp)),   # xn hi (bf16, resident)
                  full((n_pad, cp)),   # xn lo (bf16, resident)
                  full((1, n_pad)),    # 0.5*||xn_j||^2 (resident, +inf on pads)
                  full((n_pad, hp)),   # h @ Wb (all nodes, bf16, resident)
                  full((cp, hp)),      # Wa (bf16, resident)
                  full((cp, hp)),      # Wb (bf16, resident)
                  full((1, hp)),       # graph-conv bias
                  full((hp, cp)),      # fc2 weight (bf16, resident)
                  full((1, cp))],      # fc2 bias
        out_specs=row_c,
        input_output_aliases={1: 0},
        compiler_params=pltpu.CompilerParams(
            dimension_semantics=("parallel",),
            vmem_limit_bytes=_vmem_limit(_main_vmem_bytes(n_pad, cp, hp, tm))),
    )(h16, xp, xnhi, xnlo, hsq, hb16, wgap, wgbp, bgp, w2p, b2p)

    return out[:n, :c]


# ---------------------------------------------------------------------------
# Params + pure-JAX reference (f32) for verification
# ---------------------------------------------------------------------------
def init_params(key, c):
    """Deterministic synthetic parameters (shapes from Grapher.__init__)."""
    ks = jax.random.split(key, 7)
    s = 0.1
    w1t = s * jax.random.normal(ks[0], (c, c), jnp.float32)      # fc1, pre-transposed
    b1 = s * jax.random.normal(ks[1], (1, c), jnp.float32)
    wga = s * jax.random.normal(ks[2], (c, 2 * c), jnp.float32)  # EdgeConv: x_i half
    wgb = s * jax.random.normal(ks[3], (c, 2 * c), jnp.float32)  # EdgeConv: (x_j-x_i) half
    bg = s * jax.random.normal(ks[4], (1, 2 * c), jnp.float32)
    w2t = s * jax.random.normal(ks[5], (2 * c, c), jnp.float32)  # fc2, pre-transposed
    b2 = s * jax.random.normal(ks[6], (1, c), jnp.float32)
    return w1t, b1, wga, wgb, bg, w2t, b2


def grapher_ref(x, params, k):
    """Pure-JAX f32 reference (mirrors the PyTorch forward)."""
    w1t, b1, wga, wgb, bg, w2t, b2 = params
    h = jax.nn.relu(x @ w1t + b1)
    # F.normalize(dim=0): per-column normalisation across nodes.
    col_norm = jnp.sqrt(jnp.sum(h * h, axis=0, keepdims=True))
    xn = h / jnp.maximum(col_norm, 1e-12)
    sq = jnp.sum(xn * xn, axis=-1, keepdims=True)
    dist = sq - 2.0 * (xn @ xn.T) + sq.T
    _, nn_idx = jax.lax.top_k(-dist, k)                          # (N, k)
    xj = h[nn_idx]                                               # (N, k, C)
    xi = h[:, None, :]
    e = jax.nn.relu(xi @ wga + (xj - xi) @ wgb + bg)             # (N, k, 2C)
    acc = jnp.max(e, axis=1)                                     # (N, 2C)
    y = jax.nn.relu(acc @ w2t + b2)
    return y + x


if __name__ == "__main__":
    N, C, K = 16, 32, 8
    key = jax.random.PRNGKey(0)
    kx, kp = jax.random.split(key)
    x = jax.random.normal(kx, (N, C), jnp.float32)
    params = init_params(kp, C)

    out = jax.block_until_ready(grapher_forward(x, params, K))
    ref = grapher_ref(x, params, K)

    assert out.shape == (N, C)
    # bf16 MXU projections in the kernel -> relaxed tolerance vs. pure-f32 ref.
    err = float(jnp.max(jnp.abs(out - ref)))
    assert jnp.allclose(out, ref, atol=3e-2, rtol=3e-2), err
    print("KERNEL_OK")
</pallas_src>

<mosaic_0001>
module attributes {stable_mosaic.version = 11 : i64} {
  func.func @_prep_kernel(%arg0: memref<128x128xf32, #tpu.memory_space<vmem>>, %arg1: memref<128x128xf32, #tpu.memory_space<vmem>>, %arg2: memref<1x128xf32, #tpu.memory_space<vmem>>, %arg3: memref<128x128xbf16, #tpu.memory_space<vmem>>, %arg4: memref<128x128xbf16, #tpu.memory_space<vmem>>, %arg5: memref<128x128xbf16, #tpu.memory_space<vmem>>, %arg6: memref<128x128xbf16, #tpu.memory_space<vmem>>, %arg7: memref<1x128xf32, #tpu.memory_space<vmem>>, %arg8: memref<128x128xbf16, #tpu.memory_space<vmem>>) attributes {dimension_semantics = [], scalar_prefetch = 0 : i64, scratch_operands = 0 : i64, tpu.core_type = #tpu.core_type<tc>} {
    %c0 = arith.constant 0 : index
    %c0_0 = arith.constant 0 : index
    %0 = vector.load %arg0[%c0, %c0_0] : memref<128x128xf32, #tpu.memory_space<vmem>>, vector<128x128xf32>
    %c0_1 = arith.constant 0 : index
    %c0_2 = arith.constant 0 : index
    %1 = vector.load %arg1[%c0_1, %c0_2] : memref<128x128xf32, #tpu.memory_space<vmem>>, vector<128x128xf32>
    %cst = arith.constant dense<0.000000e+00> : vector<128x128xf32>
    %2 = tpu.matmul %0, %1, %cst {dimension_numbers = #tpu.dot_dimension_numbers<[1], [0], [0], [1], [0, 0, 1, 1], [], []>} : vector<128x128xf32>, vector<128x128xf32>, vector<128x128xf32> -> vector<128x128xf32>
    %c0_3 = arith.constant 0 : index
    %c0_4 = arith.constant 0 : index
    %3 = vector.load %arg2[%c0_3, %c0_4] : memref<1x128xf32, #tpu.memory_space<vmem>>, vector<1x128xf32>
    %4 = vector.broadcast %3 : vector<1x128xf32> to vector<128x128xf32>
    %5 = arith.addf %2, %4 : vector<128x128xf32>
    %cst_5 = arith.constant 0.000000e+00 : f32
    %6 = vector.broadcast %cst_5 : f32 to vector<128x128xf32>
    %7 = arith.maximumf %5, %6 : vector<128x128xf32>
    %8 = tpu.iota {dimensions = array<i32: 0>} : vector<128x1xi32>
    %c16_i32 = arith.constant 16 : i32
    %9 = vector.broadcast %c16_i32 : i32 to vector<128x1xi32>
    %10 = arith.cmpi slt, %8, %9 : vector<128x1xi32>
    %cst_6 = arith.constant 0.000000e+00 : f32
    %11 = vector.shape_cast %10 : vector<128x1xi1> to vector<128x1xi1>
    %12 = vector.broadcast %11 : vector<128x1xi1> to vector<128x128xi1>
    %13 = vector.broadcast %cst_6 : f32 to vector<128x128xf32>
    %14 = arith.select %12, %7, %13 : vector<128x128xi1>, vector<128x128xf32>
    %15 = arith.truncf %14 : vector<128x128xf32> to vector<128x128xbf16>
    %c0_7 = arith.constant 0 : index
    %c0_8 = arith.constant 0 : index
    %16 = vector.load %arg4[%c0_7, %c0_8] : memref<128x128xbf16, #tpu.memory_space<vmem>>, vector<128x128xbf16>
    tpu.vector_store %arg4[%c0_7, %c0_8], %15 {strides = array<i32>} : memref<128x128xbf16, #tpu.memory_space<vmem>>, vector<128x128xbf16>,
    %17 = arith.mulf %14, %14 : vector<128x128xf32>
    %cst_9 = arith.constant dense<0.000000e+00> : vector<128xf32>
    %18 = vector.multi_reduction <add>, %17, %cst_9 [0] : vector<128x128xf32> to vector<128xf32>
    %19 = vector.shape_cast %18 : vector<128xf32> to vector<1x128xf32>
    %cst_10 = arith.constant 1.000000e-24 : f32
    %20 = vector.broadcast %cst_10 : f32 to vector<1x128xf32>
    %21 = arith.maximumf %19, %20 : vector<1x128xf32>
    %22 = math.rsqrt %21 : vector<1x128xf32>
    %23 = vector.broadcast %22 : vector<1x128xf32> to vector<128x128xf32>
    %24 = arith.mulf %14, %23 : vector<128x128xf32>
    %25 = arith.truncf %24 : vector<128x128xf32> to vector<128x128xbf16>
    %c0_11 = arith.constant 0 : index
    %c0_12 = arith.constant 0 : index
    %26 = vector.load %arg5[%c0_11, %c0_12] : memref<128x128xbf16, #tpu.memory_space<vmem>>, vector<128x128xbf16>
    tpu.vector_store %arg5[%c0_11, %c0_12], %25 {strides = array<i32>} : memref<128x128xbf16, #tpu.memory_space<vmem>>, vector<128x128xbf16>,
    %27 = arith.extf %25 : vector<128x128xbf16> to vector<128x128xf32>
    %28 = arith.subf %24, %27 : vector<128x128xf32>
    %29 = arith.truncf %28 : vector<128x128xf32> to vector<128x128xbf16>
    %c0_13 = arith.constant 0 : index
    %c0_14 = arith.constant 0 : index
    %30 = vector.load %arg6[%c0_13, %c0_14] : memref<128x128xbf16, #tpu.memory_space<vmem>>, vector<128x128xbf16>
    tpu.vector_store %arg6[%c0_13, %c0_14], %29 {strides = array<i32>} : memref<128x128xbf16, #tpu.memory_space<vmem>>, vector<128x128xbf16>,
    %31 = arith.mulf %24, %24 : vector<128x128xf32>
    %cst_15 = arith.constant 1.000000e+00 : f32
    %32 = vector.broadcast %cst_15 : f32 to vector<1x128xf32>
    %cst_16 = arith.constant dense<0.000000e+00> : vector<1x128xf32>
    %33 = tpu.matmul %32, %31, %cst_16 {dimension_numbers = #tpu.dot_dimension_numbers<[1], [1], [0], [0], [0, 0, 1, 0], [], []>} : vector<1x128xf32>, vector<128x128xf32>, vector<1x128xf32> -> vector<1x128xf32>
    %cst_17 = arith.constant 5.000000e-01 : f32
    %34 = vector.broadcast %cst_17 : f32 to vector<1x128xf32>
    %35 = arith.mulf %34, %33 : vector<1x128xf32>
    %36 = tpu.iota {dimensions = array<i32: 1>} : vector<1x128xi32>
    %c16_i32_18 = arith.constant 16 : i32
    %37 = vector.broadcast %c16_i32_18 : i32 to vector<1x128xi32>
    %38 = arith.cmpi slt, %36, %37 : vector<1x128xi32>
    %cst_19 = arith.constant 0x7F800000 : f32
    %39 = vector.broadcast %cst_19 : f32 to vector<1x128xf32>
    %40 = arith.select %38, %35, %39 : vector<1x128xi1>, vector<1x128xf32>
    %c0_20 = arith.constant 0 : index
    %c0_21 = arith.constant 0 : index
    %41 = vector.load %arg7[%c0_20, %c0_21] : memref<1x128xf32, #tpu.memory_space<vmem>>, vector<1x128xf32>
    tpu.vector_store %arg7[%c0_20, %c0_21], %40 {strides = array<i32>} : memref<1x128xf32, #tpu.memory_space<vmem>>, vector<1x128xf32>,
    %42 = arith.truncf %14 : vector<128x128xf32> to vector<128x128xbf16>
    %c0_22 = arith.constant 0 : index
    %c0_23 = arith.constant 0 : index
    %43 = vector.load %arg3[%c0_22, %c0_23] : memref<128x128xbf16, #tpu.memory_space<vmem>>, vector<128x128xbf16>
    %cst_24 = arith.constant dense<0.000000e+00> : vector<128x128xf32>
    %44 = tpu.matmul %42, %43, %cst_24 {dimension_numbers = #tpu.dot_dimension_numbers<[1], [0], [0], [1], [0, 0, 1, 1], [], []>} : vector<128x128xbf16>, vector<128x128xbf16>, vector<128x128xf32> -> vector<128x128xf32>
    %45 = arith.truncf %44 : vector<128x128xf32> to vector<128x128xbf16>
    %c0_25 = arith.constant 0 : index
    %c0_26 = arith.constant 0 : index
    %46 = vector.load %arg8[%c0_25, %c0_26] : memref<128x128xbf16, #tpu.memory_space<vmem>>, vector<128x128xbf16>
    tpu.vector_store %arg8[%c0_25, %c0_26], %45 {strides = array<i32>} : memref<128x128xbf16, #tpu.memory_space<vmem>>, vector<128x128xbf16>,
    return
  }
}

</mosaic_0001>

<bundles_post_ra>
// kernel: tpu_custom_call.1
= control target key start
LH: loop header
LB: loop body
LE: loop exit
PB: predicated region body
PF: predicated region fallthrough
CT: control target
= control target key end

     0   :  { %14 = vsyncpa [#allocation3], 0  ;;  %s2026_s0 = inlined_call_operand.hbm [shape: f32[128,128], index: 0, kind: input, shape index: {}]   ;;  %s2027_s1 = inlined_call_operand.hbm [shape: f32[128,128], index: 1, kind: input, shape index: {}]   ;;  %s2028_s2 = inlined_call_operand.vmem [shape: f32[1,128], index: 2, kind: input, shape index: {}]   ;;  %s2029_s3 = inlined_call_operand.hbm [shape: bf16[128,128], index: 3, kind: input, shape index: {}]   ;;  %s2030_s4 = inlined_call_operand.hbm [shape: bf16[128,128], index: 4, kind: output, shape index: {0}]   ;;  %s2031_s5 = inlined_call_operand.hbm [shape: bf16[128,128], index: 5, kind: output, shape index: {1}]   ;;  %s2032_s6 = inlined_call_operand.hbm [shape: bf16[128,128], index: 6, kind: output, shape index: {2}]   ;;  %s2033_s7 = inlined_call_operand.hbm [shape: f32[1,128], index: 7, kind: output, shape index: {3}]   ;;  %s2034_s8 = inlined_call_operand.hbm [shape: bf16[128,128], index: 8, kind: output, shape index: {4}]  }
   0x1   :  { %15 = vsyncpa [#allocation6], 0 }
   0x2   :  { %16 = vsyncpa [#allocation4], 0 }
   0x3   :  { %17 = vsyncpa [#allocation10], 0 }
   0x4   :  { %18 = vsyncpa [#allocation13], 0  ;;  %s1811_s27 = smov [#allocation5]   ;;  %s1812_s29 = smov [#allocation2]  }
   0x5   :  { %s36_s28 = sshll.u32 %s1811_s27, 4  ;;  %s24_s30 = sshll.u32 %s1812_s29, 4  ;;  %s37_s28 = int_to_ptr.vmem [resolvable:$true] %s36_s28  ;;  %s1872_s30 = int_to_ptr.vmem [resolvable:$true] %s24_s30 }
   0x6   :  { %s1625_s11 = scalar_lea.hbm %s2027_s1, 2048 }
   0x7   :  { %p1626_p0 = scmp.ne.s32.totalorder %s2027_s1, %s1625_s11  ;;  %p1629_p1 = scmp.lt.u32.totalorder %s1625_s11, %s2027_s1 }
   0x9   :  { %p1631_p2 = pnand %p1629_p1, %p1626_p0 }
   0xb   :  { %1634 = shalt.err (!%p1631_p2)
}
   0xc   :  { %s1635_s16 = scalar_lea.vmem %s37_s28, 2048  ;;  %p1640_p4 = scmp.lt.s32.totalorder %s37_s28, %s37_s28 }
   0xd   :  { %p1636_p3 = scmp.ne.s32.totalorder %s37_s28, %s1635_s16  ;;  %p1641_p5 = scmp.lt.s32.totalorder %s1635_s16, %s1635_s16 }
   0xf   :  { %p1642_p6 = por %p1641_p5, %p1640_p4 }
  0x11   :  { %p1643_p7 = pnand %p1642_p6, %p1636_p3 }
  0x13   :  { %1646 = shalt.err (!%p1643_p7)
}
  0x14   :  { %s1813_s17 = smov 128   ;;  %s1814_s18 = smov 8  }
  0x15   :  { %42 = dma.hbm_to_vmem [thread:$0]  %s2027_s1, 2048, %s37_s28, [#allocation6], %s1813_s17, %s1813_s17, %s1814_s18  }
  0x16   :  { %s1647_s23 = scalar_lea.hbm %s2026_s0, 2048 }
  0x17   :  { %p1648_p8 = scmp.ne.s32.totalorder %s2026_s0, %s1647_s23  ;;  %p1651_p9 = scmp.lt.u32.totalorder %s1647_s23, %s2026_s0 }
  0x19   :  { %p1653_p10 = pnand %p1651_p9, %p1648_p8 }
  0x1b   :  { %1656 = shalt.err (!%p1653_p10)
}
  0x1c   :  { %s1657_s29 = scalar_lea.vmem %s1872_s30, 2048  ;;  %p1662_p12 = scmp.lt.s32.totalorder %s1872_s30, %s1872_s30 }
  0x1d   :  { %p1658_p11 = scmp.ne.s32.totalorder %s1872_s30, %s1657_s29  ;;  %p1663_p13 = scmp.lt.s32.totalorder %s1657_s29, %s1657_s29 }
  0x1f   :  { %p1664_p0 = por %p1663_p13, %p1662_p12 }
  0x21   :  { %p1665_p1 = pnand %p1664_p0, %p1658_p11 }
  0x23   :  { %1668 = shalt.err (!%p1665_p1)
}
  0x24   :  { %30 = dma.hbm_to_vmem [thread:$0]  %s2026_s0, 2048, %s1872_s30, [#allocation3], %s1813_s17, %s1813_s17, %s1814_s18  }
  0x25   :  { %s1815_s9 = smov [#allocation7]   ;;  %s1669_s13 = scalar_lea.hbm %s2029_s3, 1024 }
  0x26   :  { %s50_s10 = sshll.u32 %s1815_s9, 4  ;;  %p1670_p2 = scmp.ne.s32.totalorder %s2029_s3, %s1669_s13  ;;  %s51_s10 = int_to_ptr.vmem [resolvable:$true] %s50_s10 }
  0x27   :  { %p1673_p3 = scmp.lt.u32.totalorder %s1669_s13, %s2029_s3 }
  0x29   :  { %p1675_p4 = pnand %p1673_p3, %p1670_p2 }
  0x2b   :  { %1678 = shalt.err (!%p1675_p4)
}
  0x2c   :  { %s1679_s20 = scalar_lea.vmem %s51_s10, 1024  ;;  %p1684_p6 = scmp.lt.s32.totalorder %s51_s10, %s51_s10 }
  0x2d   :  { %p1680_p5 = scmp.ne.s32.totalorder %s51_s10, %s1679_s20  ;;  %p1685_p7 = scmp.lt.s32.totalorder %s1679_s20, %s1679_s20 }
  0x2f   :  { %p1686_p8 = por %p1685_p7, %p1684_p6 }
  0x31   :  { %p1687_p9 = pnand %p1686_p8, %p1680_p5 }
  0x33   :  { %1690 = shalt.err (!%p1687_p9)
}
  0x34   :  { %s1816_s0 = smov 64   ;;  %s1817_s30 = smov 4  }
  0x35   :  { %56 = dma.hbm_to_vmem [thread:$0]  %s2029_s3, 1024, %s51_s10, [#allocation6], %s1816_s0, %s1816_s0, %s1817_s30  }
  0x36   :  { %1801 = dma.done.wait [#allocation3], 2048  }
  0x37   :  { %1802 = vsyncadd [#allocation3], 4294965248 }
  0x38   :  { %1803 = dma.done.wait [#allocation6], 3072  }
  0x39   :  { %1804 = vsyncadd [#allocation6], 4294964224  ;;  %v83_v0 = vld [vmem:[#allocation5] sm:$0xff]  ;;  %v84_v1 = vld [vmem:[#allocation5 + $0x8] sm:$0xff]  ;;  %v1818_v40 = vmov 0.0|0.0   ;;  %vm1819_vm0 = vmmov 0  }
  0x3a   :  { %v85_v2 = vld [vmem:[#allocation5 + $0x10] sm:$0xff]  ;;  %v1543_v3 = vpack.c.bf16 %v84_v1, %v83_v0  ;;  %v86_v4 = vld [vmem:[#allocation5 + $0x18] sm:$0xff]  ;;  %v87_v6 = vld [vmem:[#allocation5 + $0x20] sm:$0xff]  ;;  %1575 = vmatprep.subr.bf16.mxu1 %v1818_v40  ;;  %v1820_v49 = vmov 0.0  }
  0x3b   :  { %v1547_v5 = vpack.c.bf16 %v86_v4, %v85_v2  ;;  %v88_v7 = vld [vmem:[#allocation5 + $0x28] sm:$0xff]  ;;  %v67_v9 = vld [vmem:[#allocation2] sm:$0xff]  ;;  %v89_v10 = vld [vmem:[#allocation5 + $0x30] sm:$0xff]  ;;  %1508 = vmatprep.mubr.msk.f32.mxu1 %vm1819_vm0, %v1820_v49 }
  0x3c   :  { %1544 = vmatprep.subr.bf16.mxu0 %v1543_v3  ;;  %v1551_v8 = vpack.c.bf16 %v88_v7, %v87_v6  ;;  %v90_v11 = vld [vmem:[#allocation5 + $0x38] sm:$0xff]  ;;  %1452 = vmatprep.mubr.f32.mxu0 %v67_v9  ;;  %v91_v12 = vld [vmem:[#allocation5 + $0x40] sm:$0xff]  ;;  %v92_v14 = vld [vmem:[#allocation5 + $0x48] sm:$0xff] }
  0x3d   :  { %1546 = vmatpush3.bf16.msra.mxu0 %v1543_v3  ;;  %v1555_v13 = vpack.c.bf16 %v90_v11, %v89_v10  ;;  %v93_v15 = vld [vmem:[#allocation5 + $0x50] sm:$0xff]  ;;  %v1559_v16 = vpack.c.bf16 %v92_v14, %v91_v12  ;;  %v94_v17 = vld [vmem:[#allocation5 + $0x58] sm:$0xff]  ;;  %v95_v19 = vld [vmem:[#allocation5 + $0x60] sm:$0xff] }
  0x3e   :  { %1548 = vmatprep.subr.bf16.mxu0 %v1547_v5  ;;  %v1563_v18 = vpack.c.bf16 %v94_v17, %v93_v15  ;;  %v96_v20 = vld [vmem:[#allocation5 + $0x68] sm:$0xff]  ;;  %v97_v22 = vld [vmem:[#allocation5 + $0x70] sm:$0xff]  ;;  %v98_v23 = vld [vmem:[#allocation5 + $0x78] sm:$0xff] }
  0x3f   :  { %v1567_v21 = vpack.c.bf16 %v96_v20, %v95_v19  ;;  %v1571_v24 = vpack.c.bf16 %v98_v23, %v97_v22  ;;  %v68_v25 = vld [vmem:[#allocation2 + $0x8] sm:$0xff]  ;;  %v69_v26 = vld [vmem:[#allocation2 + $0x10] sm:$0xff]  ;;  %v70_v27 = vld [vmem:[#allocation2 + $0x18] sm:$0xff] }
  0x40   :  { %v71_v28 = vld [vmem:[#allocation2 + $0x20] sm:$0xff]  ;;  %v72_v29 = vld [vmem:[#allocation2 + $0x28] sm:$0xff]  ;;  %v73_v30 = vld [vmem:[#allocation2 + $0x30] sm:$0xff] }
  0x41   :  { %1550 = vmatpush3.bf16.msra.mxu0 %v1547_v5  ;;  %v74_v31 = vld [vmem:[#allocation2 + $0x38] sm:$0xff]  ;;  %v75_v32 = vld [vmem:[#allocation2 + $0x40] sm:$0xff]  ;;  %v76_v33 = vld [vmem:[#allocation2 + $0x48] sm:$0xff] }
  0x42   :  { %1552 = vmatprep.subr.bf16.mxu0 %v1551_v8  ;;  %v77_v34 = vld [vmem:[#allocation2 + $0x50] sm:$0xff]  ;;  %v78_v35 = vld [vmem:[#allocation2 + $0x58] sm:$0xff]  ;;  %v79_v36 = vld [vmem:[#allocation2 + $0x60] sm:$0xff] }
  0x43   :  { %v80_v37 = vld [vmem:[#allocation2 + $0x68] sm:$0xff]  ;;  %v81_v38 = vld [vmem:[#allocation2 + $0x70] sm:$0xff]  ;;  %v82_v39 = vld [vmem:[#allocation2 + $0x78] sm:$0xff] }
  0x44   :  { %v1615_v41 = vld [vmem:[#allocation7] sm:$0xff]   ;;  %v1616_v42 = vld [vmem:[#allocation7 + $0x8] sm:$0xff]   ;;  %v1617_v43 = vld [vmem:[#allocation7 + $0x10] sm:$0xff]  }
  0x45   :  { %1554 = vmatpush3.bf16.msra.mxu0 %v1551_v8  ;;  %v1618_v44 = vld [vmem:[#allocation7 + $0x18] sm:$0xff]   ;;  %v1619_v45 = vld [vmem:[#allocation7 + $0x20] sm:$0xff]   ;;  %v1620_v46 = vld [vmem:[#allocation7 + $0x28] sm:$0xff]  }
  0x46   :  { %1556 = vmatprep.subr.bf16.mxu0 %v1555_v13  ;;  %v1621_v47 = vld [vmem:[#allocation7 + $0x30] sm:$0xff]   ;;  %v1622_v48 = vld [vmem:[#allocation7 + $0x38] sm:$0xff]   ;;  %v1086_v50 = vld [vmem:[%s2028_s2] ss:$0 sm:$0xff]  ;;  %s1822_s2 = smov [#allocation9]  }
  0x47   :  { %s1025_s22 = sshll.u32 %s1822_s2, 4  ;;  %s1026_s22 = int_to_ptr.vmem [resolvable:$true] %s1025_s22 }
  0x48   :  { %s1691_s23 = scalar_lea.vmem %s1026_s22, 1024  ;;  %p1696_p11 = scmp.lt.s32.totalorder %s1026_s22, %s1026_s22 }
  0x49   :  { %1558 = vmatpush3.bf16.msra.mxu0 %v1555_v13  ;;  %p1692_p10 = scmp.ne.s32.totalorder %s1026_s22, %s1691_s23  ;;  %p1697_p12 = scmp.lt.s32.totalorder %s1691_s23, %s1691_s23 }
  0x4a   :  { %1560 = vmatprep.subr.bf16.mxu0 %v1559_v16 }
  0x4b   :  { %p1698_p13 = por %p1697_p12, %p1696_p11 }
  0x4d   :  { %1562 = vmatpush3.bf16.msra.mxu0 %v1559_v16  ;;  %p1699_p0 = pnand %p1698_p13, %p1692_p10 }
  0x4e   :  { %1564 = vmatprep.subr.bf16.mxu0 %v1563_v18 }
  0x51   :  { %1566 = vmatpush3.bf16.msra.mxu0 %v1563_v18 }
  0x52   :  { %1568 = vmatprep.subr.bf16.mxu0 %v1567_v21 }
  0x55   :  { %1570 = vmatpush3.bf16.msra.mxu0 %v1567_v21 }
  0x56   :  { %1572 = vmatprep.subr.bf16.mxu0 %v1571_v24 }
  0x59   :  { %1574 = vmatpush3.bf16.msra.mxu0 %v1571_v24 }
  0x5a   :  { %1511 = vmatprep.subr.bf16.mxu0 %v1615_v41 }
  0x5c   :  { %1453 = vmatmul.mubr.f32.vlgmr.msra.gmra.mrb[0].mxu0 %v68_v25 }
  0x5d   :  { %1455 = vmatprep.mubr.f32.mxu0 %v69_v26  ;;  %1512 = vmatpush3.bf16.msra.mxu0 %v1615_v41  ;;  %v1089_v41 = vcombine.low %v1818_v40, %v1818_v40 }
  0x5e   :  { %1513 = vmatprep.subr.bf16.mxu0 %v1616_v42 }
  0x60   :  { %1456 = vmatmul.mubr.f32.gmra.mrb[2].mxu0 %v70_v27 }
  0x61   :  { %1458 = vmatprep.mubr.f32.mxu0 %v71_v28  ;;  %1514 = vmatpush3.bf16.msra.mxu0 %v1616_v42  ;;  %v1090_v42 = vcombine.high %v1818_v40, %v1818_v40 }
  0x62   :  { %1515 = vmatprep.subr.bf16.mxu0 %v1617_v43 }
  0x64   :  { %1459 = vmatmul.mubr.f32.gmra.mrb[4].mxu0 %v72_v29 }
  0x65   :  { %1461 = vmatprep.mubr.f32.mxu0 %v73_v30  ;;  %1516 = vmatpush3.bf16.msra.mxu0 %v1617_v43 }
  0x66   :  { %1517 = vmatprep.subr.bf16.mxu0 %v1618_v44 }
  0x68   :  { %1462 = vmatmul.mubr.f32.gmra.mrb[6].mxu0 %v74_v31 }
  0x69   :  { %1464 = vmatprep.mubr.f32.mxu0 %v75_v32  ;;  %1518 = vmatpush3.bf16.msra.mxu0 %v1618_v44 }
  0x6a   :  { %1519 = vmatprep.subr.bf16.mxu0 %v1619_v45 }
  0x6c   :  { %1465 = vmatmul.mubr.f32.gmra.mrb[8].mxu0 %v76_v33 }
  0x6d   :  { %1467 = vmatprep.mubr.f32.mxu0 %v77_v34  ;;  %1520 = vmatpush3.bf16.msra.mxu0 %v1619_v45 }
  0x6e   :  { %1521 = vmatprep.subr.bf16.mxu0 %v1620_v46 }
  0x70   :  { %1468 = vmatmul.mubr.f32.gmra.mrb[10].mxu0 %v78_v35 }
  0x71   :  { %1470 = vmatprep.mubr.f32.mxu0 %v79_v36  ;;  %1522 = vmatpush3.bf16.msra.mxu0 %v1620_v46 }
  0x72   :  { %1523 = vmatprep.subr.bf16.mxu0 %v1621_v47 }
  0x74   :  { %1471 = vmatmul.mubr.f32.gmra.mrb[12].mxu0 %v80_v37 }
  0x75   :  { %1473 = vmatprep.mubr.f32.mxu0 %v81_v38  ;;  %1524 = vmatpush3.bf16.msra.mxu0 %v1621_v47 }
  0x76   :  { %1525 = vmatprep.subr.bf16.mxu0 %v1622_v48 }
  0x78   :  { %1474 = vmatmul.mubr.f32.gmra.mrb[14].mxu0 %v82_v39  ;;  %v1821_v39 = vmov 1.0  }
  0x79   :  { %1526 = vmatpush3.bf16.msra.mxu0 %v1622_v48 }
 0x12f   :  { %v1454_v51 = vpop.f32.mrb[0].mxu0 }
 0x130   :  { %v178_v52 = vadd.f32 %v1454_v51, %v1086_v50  ;;  %v172_v53 = vpop.f32.mrb[1].mxu0 }
 0x131   :  { %v173_v54 = vadd.f32 %v1086_v50, %v172_v53 }
 0x132   :  { %v252_v55 = vmax.f32 %v178_v52, 0.0 }
 0x133   :  { %v251_v56 = vmax.f32 %v173_v54, 0.0  ;;  %v1457_v57 = vpop.f32.mrb[2].mxu0 }
 0x134   :  { %v429_v58 = vmul.f32 %v252_v55, %v252_v55  ;;  %v182_v59 = vpop.f32.mrb[3].mxu0 }
 0x135   :  { %v428_v60 = vmul.f32 %v251_v56, %v251_v56  ;;  %v348_v61 = vpack.c.bf16 %v252_v55, %v251_v56 }
 0x137   :  { %v444_v62 = vadd.f32 %v429_v58, %v428_v60  ;;  %1213 = vst [vmem:[#allocation8] sm:$0xff] %v348_v61   ;;  %1527 = vmatprep.mubr.bf16.mxu0 %v348_v61  ;;  %v1460_v63 = vpop.f32.mrb[4].mxu0 }
 0x138   :  { %1528 = vmatmul.mubr.bf16.vlgmr.msra.gmra.mrb[16].mxu0 %v1818_v40  ;;  %v192_v0 = vpop.f32.mrb[5].mxu0 }
 0x139   :  { %v459_v1 = vrot.slane %v444_v62, 4  ;;  %1531 = vmatprep.mubr.bf16.mxu0 %v1818_v40 }
 0x13b   :  { %v460_v2 = vadd.f32 %v459_v1, %v444_v62  ;;  %v1463_v3 = vpop.f32.mrb[6].mxu0 }
 0x13c   :  { %v202_v4 = vpop.f32.mrb[7].mxu0 }
 0x13d   :  { %v461_v5 = vrot.slane %v460_v2, 2 }
 0x13f   :  { %v462_v6 = vadd.f32 %v461_v5, %v460_v2  ;;  %v1466_v7 = vpop.f32.mrb[8].mxu0 }
 0x140   :  { %1532 = vmatmul.mubr.bf16.gmra.mrb[20].mxu0 %v1818_v40  ;;  %v212_v8 = vpop.f32.mrb[9].mxu0 }
 0x141   :  { %v463_v9 = vrot.slane %v462_v6, 1  ;;  %1535 = vmatprep.mubr.bf16.mxu0 %v1818_v40 }
 0x143   :  { %v464_v10 = vadd.f32 %v463_v9, %v462_v6  ;;  %v1469_v11 = vpop.f32.mrb[10].mxu0 }
 0x144   :  { %v222_v12 = vpop.f32.mrb[11].mxu0 }
 0x145   :  { %v465_v13 = vmax.f32 %v464_v10, 1e-24 }
 0x147   :  { %1623 = vrsqrt.f32 %v465_v13  ;;  %v1472_v35 = vpop.f32.mrb[12].mxu0 }
 0x148   :  { %1536 = vmatmul.mubr.bf16.gmra.mrb[24].mxu0 %v1818_v40  ;;  %v232_v36 = vpop.f32.mrb[13].mxu0 }
 0x149   :  { %1539 = vmatprep.mubr.bf16.mxu0 %v1818_v40 }
 0x14b   :  { %v1475_v37 = vpop.f32.mrb[14].mxu0 }
 0x14c   :  { %v242_v38 = vpop.f32.mrb[15].mxu0 }
 0x150   :  { %1540 = vmatmul.mubr.bf16.gmra.mrb[28].mxu0 %v1818_v40 }
 0x151   :  { %v1624_v14 = vpop.eup %1623 }
 0x152   :  { %v467_v15 = vmul.f32 %v1624_v14, %v251_v56  ;;  %v468_v16 = vmul.f32 %v1624_v14, %v252_v55  ;;  %v469_v17 = vmul.f32 0.0, %v1624_v14 }
 0x154   :  { %v483_v18 = vpack.c.bf16 %v468_v16, %v467_v15  ;;  %v675_v19 = vmul.f32 %v467_v15, %v467_v15  ;;  %v676_v20 = vmul.f32 %v468_v16, %v468_v16  ;;  %v484_v21 = vpack.c.bf16 %v469_v17, %v469_v17 }
 0x155   :  { %v677_v32 = vmul.f32 %v469_v17, %v469_v17 }
 0x156   :  { %1218 = vst [vmem:[#allocation9] sm:$0xff] %v483_v18   ;;  %v563_v22 = vunpack.c.l.bf16 %v483_v18  ;;  %v564_v23 = vunpack.c.h.bf16 %v483_v18  ;;  %v1576_v24 = vpack.c.bf16 %v676_v20, %v675_v19  ;;  %v565_v25 = vunpack.c.l.bf16 %v484_v21  ;;  %1334 = vst [vmem:[#allocation9 + $0x8] sm:$0xff] %v484_v21  }
 0x157   :  { %1335 = vst [vmem:[#allocation9 + $0x10] sm:$0xff] %v484_v21   ;;  %1336 = vst [vmem:[#allocation9 + $0x18] sm:$0xff] %v484_v21   ;;  %v566_v26 = vunpack.c.h.bf16 %v484_v21  ;;  %v1579_v34 = vpack.c.bf16 %v677_v32, %v677_v32 }
 0x158   :  { %1337 = vst [vmem:[#allocation9 + $0x20] sm:$0xff] %v484_v21   ;;  %1338 = vst [vmem:[#allocation9 + $0x28] sm:$0xff] %v484_v21   ;;  %v579_v27 = vsub.f32 %v467_v15, %v563_v22  ;;  %v580_v28 = vsub.f32 %v468_v16, %v564_v23  ;;  %1577 = vmatpush3.bf16.xpose.msra.mxu1 %v1576_v24  ;;  %v581_v29 = vsub.f32 %v469_v17, %v565_v25 }
 0x159   :  { %1339 = vst [vmem:[#allocation9 + $0x30] sm:$0xff] %v484_v21   ;;  %1340 = vst [vmem:[#allocation9 + $0x38] sm:$0xff] %v484_v21   ;;  %1578 = vmatprep.subr.bf16.mxu1 %v1818_v40  ;;  %v582_v30 = vsub.f32 %v469_v17, %v566_v26 }
 0x15a   :  { %v1257_v31 = vpack.c.bf16 %v580_v28, %v579_v27 }
 0x15b   :  { %v1262_v33 = vpack.c.bf16 %v582_v30, %v581_v29 }
 0x15c   :  { %1258 = vst [vmem:[#allocation11] sm:$0xff] %v1257_v31  }
 0x15d   :  { %1341 = vst [vmem:[#allocation11 + $0x8] sm:$0xff] %v1262_v33   ;;  %1342 = vst [vmem:[#allocation11 + $0x10] sm:$0xff] %v1262_v33  }
 0x15e   :  { %1343 = vst [vmem:[#allocation11 + $0x18] sm:$0xff] %v1262_v33   ;;  %1344 = vst [vmem:[#allocation11 + $0x20] sm:$0xff] %v1262_v33  }
 0x15f   :  { %1345 = vst [vmem:[#allocation11 + $0x28] sm:$0xff] %v1262_v33   ;;  %1346 = vst [vmem:[#allocation11 + $0x30] sm:$0xff] %v1262_v33  }
 0x160   :  { %1347 = vst [vmem:[#allocation11 + $0x38] sm:$0xff] %v1262_v33   ;;  %1580 = vmatpush3.bf16.xpose.msra.mxu1 %v1579_v34 }
 0x161   :  { %1581 = vmatprep.subr.bf16.mxu1 %v1818_v40 }
 0x168   :  { %1583 = vmatpush3.bf16.xpose.msra.mxu1 %v1579_v34 }
 0x169   :  { %1584 = vmatprep.subr.bf16.mxu1 %v1818_v40 }
 0x170   :  { %1586 = vmatpush3.bf16.xpose.msra.mxu1 %v1579_v34 }
 0x171   :  { %1587 = vmatprep.subr.bf16.mxu1 %v1818_v40 }
 0x178   :  { %1589 = vmatpush3.bf16.xpose.msra.mxu1 %v1579_v34 }
 0x179   :  { %1590 = vmatprep.subr.bf16.mxu1 %v1818_v40 }
 0x180   :  { %1592 = vmatpush3.bf16.xpose.msra.mxu1 %v1579_v34 }
 0x181   :  { %1593 = vmatprep.subr.bf16.mxu1 %v1818_v40 }
 0x188   :  { %1595 = vmatpush3.bf16.xpose.msra.mxu1 %v1579_v34 }
 0x189   :  { %1596 = vmatprep.subr.bf16.mxu1 %v1818_v40 }
 0x190   :  { %1598 = vmatpush3.bf16.xpose.msra.mxu1 %v1579_v34 }
 0x197   :  { %1509 = vmatmul.mubr.f32.vlgmr.msra.gmra.mrb[0].mxu1 %v1821_v39 }
 0x198   :  { %1702 = shalt.err (!%p1699_p0)
}
 0x199   :  { %s1703_s26 = scalar_lea.hbm %s2031_s5, 1024 }
 0x19a   :  { %p1704_p1 = scmp.ne.s32.totalorder %s2031_s5, %s1703_s26  ;;  %p1707_p2 = scmp.lt.u32.totalorder %s1703_s26, %s2031_s5 }
 0x19c   :  { %p1709_p3 = pnand %p1707_p2, %p1704_p1 }
 0x19e   :  { %1712 = shalt.err (!%p1709_p3)
}
 0x19f   :  { %1031 = dma.vmem_to_hbm [thread:$0]  %s1026_s22, 1024, %s2031_s5, [#allocation10], %s1816_s0, %s1816_s0, %s1817_s30   ;;  %414 = vst [vmem:[#allocation8 + $0x8] sm:$0xf] %v1089_v41  ;;  %415 = vst [vmem:[#allocation8 + $0xc] sm:$0xf] %v1090_v42 }
 0x1a0   :  { %416 = vst [vmem:[#allocation8 + $0x10] sm:$0xf] %v1089_v41  ;;  %417 = vst [vmem:[#allocation8 + $0x14] sm:$0xf] %v1090_v42  ;;  %s1823_s11 = smov [#allocation8]   ;;  %s1824_s13 = smov [#allocation11]  }
 0x1a1   :  { %418 = vst [vmem:[#allocation8 + $0x18] sm:$0xf] %v1089_v41  ;;  %419 = vst [vmem:[#allocation8 + $0x1c] sm:$0xf] %v1090_v42  ;;  %s1013_s12 = sshll.u32 %s1823_s11, 4  ;;  %s1037_s14 = sshll.u32 %s1824_s13, 4  ;;  %s1014_s12 = int_to_ptr.vmem [resolvable:$true] %s1013_s12  ;;  %s1955_s14 = int_to_ptr.vmem [resolvable:$true] %s1037_s14 }
 0x1a2   :  { %420 = vst [vmem:[#allocation8 + $0x20] sm:$0xf] %v1089_v41  ;;  %421 = vst [vmem:[#allocation8 + $0x24] sm:$0xf] %v1090_v42  ;;  %s1713_s5 = scalar_lea.vmem %s1014_s12, 1024  ;;  %p1718_p5 = scmp.lt.s32.totalorder %s1014_s12, %s1014_s12 }
 0x1a3   :  { %422 = vst [vmem:[#allocation8 + $0x28] sm:$0xf] %v1089_v41  ;;  %423 = vst [vmem:[#allocation8 + $0x2c] sm:$0xf] %v1090_v42  ;;  %p1714_p4 = scmp.ne.s32.totalorder %s1014_s12, %s1713_s5  ;;  %p1719_p6 = scmp.lt.s32.totalorder %s1713_s5, %s1713_s5 }
 0x1a4   :  { %424 = vst [vmem:[#allocation8 + $0x30] sm:$0xf] %v1089_v41  ;;  %425 = vst [vmem:[#allocation8 + $0x34] sm:$0xf] %v1090_v42 }
 0x1a5   :  { %426 = vst [vmem:[#allocation8 + $0x38] sm:$0xf] %v1089_v41  ;;  %427 = vst [vmem:[#allocation8 + $0x3c] sm:$0xf] %v1090_v42  ;;  %p1720_p7 = por %p1719_p6, %p1718_p5 }
 0x1a7   :  { %p1721_p8 = pnand %p1720_p7, %p1714_p4 }
 0x1a9   :  { %1724 = shalt.err (!%p1721_p8)
}
 0x1aa   :  { %s1725_s19 = scalar_lea.hbm %s2030_s4, 1024 }
 0x1ab   :  { %p1726_p9 = scmp.ne.s32.totalorder %s2030_s4, %s1725_s19  ;;  %p1729_p10 = scmp.lt.u32.totalorder %s1725_s19, %s2030_s4 }
 0x1ad   :  { %p1731_p11 = pnand %p1729_p10, %p1726_p9 }
 0x1af   :  { %1734 = shalt.err (!%p1731_p11)
}
 0x1b0   :  { %1019 = dma.vmem_to_hbm [thread:$0]  %s1014_s12, 1024, %s2030_s4, [#allocation4], %s1816_s0, %s1816_s0, %s1817_s30  }
 0x1b1   :  { %s1735_s22 = scalar_lea.vmem %s1955_s14, 1024  ;;  %p1740_p13 = scmp.lt.s32.totalorder %s1955_s14, %s1955_s14 }
 0x1b2   :  { %p1736_p12 = scmp.ne.s32.totalorder %s1955_s14, %s1735_s22  ;;  %p1741_p0 = scmp.lt.s32.totalorder %s1735_s22, %s1735_s22 }
 0x1b4   :  { %p1742_p1 = por %p1741_p0, %p1740_p13 }
 0x1b6   :  { %p1743_p2 = pnand %p1742_p1, %p1736_p12 }
 0x1b8   :  { %1746 = shalt.err (!%p1743_p2)
}
 0x1b9   :  { %s1747_s25 = scalar_lea.hbm %s2032_s6, 1024 }
 0x1ba   :  { %p1748_p3 = scmp.ne.s32.totalorder %s2032_s6, %s1747_s25  ;;  %p1751_p4 = scmp.lt.u32.totalorder %s1747_s25, %s2032_s6 }
 0x1bc   :  { %p1753_p5 = pnand %p1751_p4, %p1748_p3 }
 0x1be   :  { %1756 = shalt.err (!%p1753_p5)
}
 0x1bf   :  { %1043 = dma.vmem_to_hbm [thread:$0]  %s1955_s14, 1024, %s2032_s6, [#allocation10], %s1816_s0, %s1816_s0, %s1817_s30   ;;  %v762_v2 = vlaneseq }
 0x1c0   :  { %s1825_s6 = smov [#allocation12]   ;;  %s1826_s10 = smov [#allocation14]  }
 0x1c1   :  { %v763_v3 = vand.u32 127, %v762_v2  ;;  %s1050_s9 = sshll.u32 %s1825_s6, 4  ;;  %s1059_s11 = sshll.u32 %s1826_s10, 4  ;;  %s1051_s9 = int_to_ptr.vmem [resolvable:$true] %s1050_s9  ;;  %s1992_s11 = int_to_ptr.vmem [resolvable:$true] %s1059_s11 }
 0x1c2   :  { %s1757_s12 = scalar_lea.vmem %s1051_s9, 16  ;;  %s1761_s13 = scalar_lea.vmem %s1051_s9, 32 }
 0x1c3   :  { %vm764_vm1 = vcmp.lt.s32.totalorder %v763_v3, 16  ;;  %p1758_p6 = scmp.ne.s32.totalorder %s1051_s9, %s1757_s12  ;;  %p1762_p7 = scmp.lt.s32.totalorder %s1051_s9, %s1051_s9 }
 0x1c4   :  { %p1763_p8 = scmp.lt.s32.totalorder %s1761_s13, %s1757_s12 }
 0x1c6   :  { %p1764_p9 = por %p1763_p8, %p1762_p7 }
 0x1c8   :  { %p1765_p10 = pnand %p1764_p9, %p1758_p6 }
 0x20b   :  { %v1529_v40 = vpop.f32.mrb[16].mxu0 }
 0x20c   :  { %v865_v43 = vpop.f32.mrb[17].mxu0 }
 0x20d   :  { %v1530_v44 = vpop.f32.mrb[18].mxu0 }
 0x20e   :  { %v1302_v45 = vpack.c.bf16 %v1530_v44, %v1529_v40  ;;  %v868_v46 = vpop.f32.mrb[19].mxu0 }
 0x20f   :  { %v1297_v47 = vpack.c.bf16 %v868_v46, %v865_v43 }
 0x210   :  { %1348 = vst [vmem:[#allocation14 + $0x8] sm:$0xff] %v1302_v45  }
 0x211   :  { %1298 = vst [vmem:[#allocation14] sm:$0xff] %v1297_v47  }
 0x213   :  { %v1533_v48 = vpop.f32.mrb[20].mxu0 }
 0x214   :  { %v881_v49 = vpop.f32.mrb[21].mxu0 }
 0x215   :  { %v1534_v50 = vpop.f32.mrb[22].mxu0 }
 0x216   :  { %v1312_v51 = vpack.c.bf16 %v1534_v50, %v1533_v48  ;;  %v884_v52 = vpop.f32.mrb[23].mxu0 }
 0x217   :  { %v1307_v53 = vpack.c.bf16 %v884_v52, %v881_v49 }
 0x218   :  { %1350 = vst [vmem:[#allocation14 + $0x18] sm:$0xff] %v1312_v51  }
 0x219   :  { %1349 = vst [vmem:[#allocation14 + $0x10] sm:$0xff] %v1307_v53  }
 0x21b   :  { %v1537_v54 = vpop.f32.mrb[24].mxu0 }
 0x21c   :  { %v897_v55 = vpop.f32.mrb[25].mxu0 }
 0x21d   :  { %v1538_v56 = vpop.f32.mrb[26].mxu0 }
 0x21e   :  { %v1322_v57 = vpack.c.bf16 %v1538_v56, %v1537_v54  ;;  %v900_v58 = vpop.f32.mrb[27].mxu0 }
 0x21f   :  { %v1317_v59 = vpack.c.bf16 %v900_v58, %v897_v55 }
 0x220   :  { %1352 = vst [vmem:[#allocation14 + $0x28] sm:$0xff] %v1322_v57  }
 0x221   :  { %1351 = vst [vmem:[#allocation14 + $0x20] sm:$0xff] %v1317_v59  }
 0x223   :  { %v1541_v60 = vpop.f32.mrb[28].mxu0 }
 0x224   :  { %v913_v61 = vpop.f32.mrb[29].mxu0 }
 0x225   :  { %v1542_v62 = vpop.f32.mrb[30].mxu0 }
 0x226   :  { %v1332_v63 = vpack.c.bf16 %v1542_v62, %v1541_v60  ;;  %v916_v0 = vpop.f32.mrb[31].mxu0 }
 0x227   :  { %v1327_v1 = vpack.c.bf16 %v916_v0, %v913_v61 }
 0x228   :  { %1354 = vst [vmem:[#allocation14 + $0x38] sm:$0xff] %v1332_v63  }
 0x229   :  { %1353 = vst [vmem:[#allocation14 + $0x30] sm:$0xff] %v1327_v1  }
 0x26a   :  { %v757_v4 = vpop.f32.mrb[0].mxu1 }
 0x26b   :  { %v761_v5 = vmul.f32 0.5, %v757_v4  ;;  %v1510_v6 = vpop.f32.mrb[1].mxu1 }
 0x26d   :  { %v765_v7 = vsel %vm764_vm1, %v761_v5, inf }
 0x26e   :  { %766 = vst [vmem:[#allocation12] sm:$0x1] %v765_v7 }
 0x26f   :  { %1768 = shalt.err (!%p1765_p10)
}
 0x270   :  { %s1769_s15 = scalar_lea.hbm %s2033_s7, 16 }
 0x271   :  { %p1770_p11 = scmp.ne.s32.totalorder %s2033_s7, %s1769_s15  ;;  %p1773_p12 = scmp.lt.u32.totalorder %s1769_s15, %s2033_s7 }
 0x273   :  { %p1775_p13 = pnand %p1773_p12, %p1770_p11 }
 0x275   :  { %1778 = shalt.err (!%p1775_p13)
}
 0x276   :  { %1053 = dma.vmem_to_hbm [thread:$0]  %s1051_s9, 16, %s2033_s7, [#allocation13]  }
 0x277   :  { %s1779_s21 = scalar_lea.vmem %s1992_s11, 1024  ;;  %p1784_p1 = scmp.lt.s32.totalorder %s1992_s11, %s1992_s11 }
 0x278   :  { %p1780_p0 = scmp.ne.s32.totalorder %s1992_s11, %s1779_s21  ;;  %p1785_p2 = scmp.lt.s32.totalorder %s1779_s21, %s1779_s21 }
 0x27a   :  { %p1786_p3 = por %p1785_p2, %p1784_p1 }
 0x27c   :  { %p1787_p4 = pnand %p1786_p3, %p1780_p0 }
 0x27e   :  { %1790 = shalt.err (!%p1787_p4)
}
 0x27f   :  { %s1791_s23 = scalar_lea.hbm %s2034_s8, 1024 }
 0x280   :  { %p1792_p5 = scmp.ne.s32.totalorder %s2034_s8, %s1791_s23  ;;  %p1795_p6 = scmp.lt.u32.totalorder %s1791_s23, %s2034_s8 }
 0x282   :  { %p1797_p7 = pnand %p1795_p6, %p1792_p5 }
 0x284   :  { %1800 = shalt.err (!%p1797_p7)
}
 0x285   :  { %1065 = dma.vmem_to_hbm [thread:$0]  %s1992_s11, 1024, %s2034_s8, [#allocation13], %s1816_s0, %s1816_s0, %s1817_s30  }
 0x286   :  { %1805 = dma.done.wait [#allocation4], 1024  }
 0x287   :  { %1806 = vsyncadd [#allocation4], 4294966272 }
 0x288   :  { %1807 = dma.done.wait [#allocation10], 2048  }
 0x289   :  { %1808 = vsyncadd [#allocation10], 4294965248 }
 0x28a   :  { %1809 = dma.done.wait [#allocation13], 1040  }
 0x28b   :  { %1810 = vsyncadd [#allocation13], 4294966256 }
 0x28c   :  { %1081 = vsyncpa [#allocation3], 1 }
 0x28d   :  { %1082 = vsyncpa [#allocation6], 1 }
 0x28e   :  { %1083 = vsyncpa [#allocation4], 1 }
 0x28f   :  { %1084 = vsyncpa [#allocation10], 1 }
 0x290   :  { %1085 = vsyncpa [#allocation13], 1 }

</bundles_post_ra>
